<compile_context>
chip_gen: v7x
topology: tpu7x:2x2x1
jax: 0.10.0
libtpu: 0.0.40
codegen_flags: <defaults>
</compile_context>

<pallas_src>
import functools

import jax
import jax.numpy as jnp
from jax import lax
from jax.experimental import pallas as pl
from jax.experimental.pallas import tpu as pltpu

_LANES = 128


def _chip_kind():
    try:
        return jax.devices()[0].device_kind.lower()
    except Exception:
        return ""


def _generation_defaults():
    """Returns (tile_budget_bytes, num_splits, vmem_limit_bytes, reduce_on_mxu)."""
    kind = _chip_kind()
    if "v7" in kind:
        # 2 TCs -> 2-way "parallel" split; 64 MiB VMEM/TC -> 2 inputs x 2 bufs x 6 MiB
        # tiles plus headroom; offload the lane reduce to the idle MXU.
        return 6 << 20, 2, 40 << 20, True
    if "v6" in kind:
        # Single TC, 128 MiB VMEM: big streaming tiles, explicit scoped-VMEM limit.
        return 6 << 20, 1, 64 << 20, False
    if "v5" in kind:
        # Single TC, 16 MiB default scoped VMEM: 2 x 2 x 3 MiB fits without raising it.
        return 3 << 20, 1, None, False
    return 2 << 20, 1, None, False  # unknown chip: conservative, runs anywhere


def _decoder_loss_kernel(thr_ref, recon_ref, targets_ref,
                         l1m_ref, l2m_ref, l1u_ref, l2u_ref,
                         *, flat, reduce_on_mxu):
    """One (B, tile_rows, 128) tile of the streaming loss reduction.

    thr_ref      : (B, 1, 1) int32, per-batch threshold = lengths * D
    recon/target : (B, tile_rows, 128) input tiles (f32 or bf16)
    l*_ref       : (1, B, 1) f32 resident accumulators (raw sums)
    """
    B, tile_rows, lanes = recon_ref.shape

    @pl.when(pl.program_id(1) == 0)
    def _init():
        l1m_ref[...] = jnp.zeros_like(l1m_ref)
        l2m_ref[...] = jnp.zeros_like(l2m_ref)
        l1u_ref[...] = jnp.zeros_like(l1u_ref)
        l2u_ref[...] = jnp.zeros_like(l2u_ref)

    # Within-tile flat column index, shape (1, tR, 128).  No program_id dependence,
    # so it is loop-invariant and hoistable out of the grid loop.
    row_i = lax.broadcasted_iota(jnp.int32, (1, tile_rows, lanes), 1)
    lane_i = lax.broadcasted_iota(jnp.int32, (1, tile_rows, lanes), 2)
    idx = row_i * lanes + lane_i

    # Fold the tile offset into the (tiny) thresholds instead of the big index.
    tile_id = pl.program_id(0) * pl.num_programs(1) + pl.program_id(1)
    off = tile_id * (tile_rows * lanes)              # scalar int32
    thr_local = thr_ref[...] - off                   # (B, 1, 1)
    bound_local = flat - off                         # scalar: end of real data

    diff = recon_ref[...].astype(jnp.float32) - targets_ref[...].astype(jnp.float32)
    # Zero everything past the real row extent (128-pad zeros, edge-block garbage,
    # duplicated clamped tiles) so the unmasked sums stay exact.  The masked region
    # (lengths*D <= T*D) is always a subset of this bound.
    diff = jnp.where(idx < bound_local, diff, 0.0)
    abs_d = jnp.abs(diff)
    sq_d = diff * diff
    in_mask = idx < thr_local                        # (B, tR, 128) via broadcast
    abs_m = jnp.where(in_mask, abs_d, 0.0)
    sq_m = jnp.where(in_mask, sq_d, 0.0)

    if reduce_on_mxu:
        # Lane reduction on the (otherwise idle) MXU: per-batch (tR,128) @ (128,1),
        # then a tiny sublane fold.  Keeps VPU work at ~7 ops/element on v7x.
        ones_col = jnp.ones((lanes, 1), jnp.float32)

        def _psum(x):                                # (B, tR, 128) -> (1, B, 1)
            parts = [jnp.sum(jnp.dot(x[b], ones_col,
                                     preferred_element_type=jnp.float32),
                             axis=0, keepdims=True)
                     for b in range(B)]              # B x (1, 1)
            return jnp.concatenate(parts, axis=0)[None]
    else:
        def _psum(x):                                # (B, tR, 128) -> (1, B, 1)
            s = jnp.sum(x, axis=2)                   # lane reduce (XLU tree)
            return jnp.sum(s, axis=1, keepdims=True)[None]

    l1m_ref[...] += _psum(abs_m)
    l2m_ref[...] += _psum(sq_m)
    l1u_ref[...] += _psum(abs_d)
    l2u_ref[...] += _psum(sq_d)


def _plan(B, R, itemsize, tile_rows, num_splits, tile_budget):
    """Pick (tile_rows, n_tiles, num_splits, n_inner) for the (B, R, 128) layout."""
    if tile_rows is None:
        tile_rows = max(8, (tile_budget // (B * _LANES * itemsize)) // 8 * 8)
    tile_rows = max(8, -(-tile_rows // 8) * 8)          # multiple of 8
    tile_rows = min(tile_rows, -(-R // 8) * 8)          # never bigger than the array
    n_tiles = -(-R // tile_rows)
    num_splits = max(1, min(num_splits, n_tiles))
    n_inner = -(-n_tiles // num_splits)
    return tile_rows, n_tiles, num_splits, n_inner


def base_decoder_losses(reconstructed, targets, lengths, *,
                        tile_rows=None, num_splits=None,
                        vmem_limit_bytes=None, reduce_on_mxu=None):
    """reconstructed, targets: (B, T, D); lengths: (B,) int (assumed > 0, <= T).

    Returns scalars (l1_masked, l2_masked, l1_unmasked, l2_unmasked), matching
    BaseDecoder._compute_l1_loss / _compute_l2_loss with and without lengths.
    """
    assert reconstructed.shape == targets.shape
    B, T, D = reconstructed.shape
    lengths = lengths.astype(jnp.int32)
    itemsize = jnp.dtype(reconstructed.dtype).itemsize

    budget, def_splits, def_vmem, def_mxu = _generation_defaults()
    if num_splits is None:
        num_splits = def_splits
    if vmem_limit_bytes is None:
        vmem_limit_bytes = def_vmem
    if reduce_on_mxu is None:
        reduce_on_mxu = def_mxu

    flat = T * D
    R = -(-flat // _LANES)

    rec2 = reconstructed.reshape(B, flat)
    tgt2 = targets.reshape(B, flat)
    pad_cols = R * _LANES - flat
    if pad_cols:
        # Minimum pad only (< 128 cols, required for the lane-dense reshape); all
        # tile/split raggedness is handled in-kernel by the bound threshold.
        rec2 = jnp.pad(rec2, ((0, 0), (0, pad_cols)))
        tgt2 = jnp.pad(tgt2, ((0, 0), (0, pad_cols)))
    rec3 = rec2.reshape(B, R, _LANES)
    tgt3 = tgt2.reshape(B, R, _LANES)

    tR, n_tiles, C, n_inner = _plan(B, R, itemsize, tile_rows, num_splits, budget)

    thr = (lengths * jnp.int32(D)).reshape(B, 1, 1)     # mask threshold per batch

    if C * n_inner == n_tiles:
        row_map = lambda c, r: (0, c * n_inner + r, 0)
    else:
        # Ragged split: clamp the block index; duplicated tiles contribute exactly 0
        # because their shifted thresholds (thr - off, flat - off) are <= 0.
        row_map = lambda c, r: (0, jnp.minimum(c * n_inner + r, n_tiles - 1), 0)

    acc_shape = jax.ShapeDtypeStruct((C, B, 1), jnp.float32)
    kernel = functools.partial(_decoder_loss_kernel, flat=flat,
                               reduce_on_mxu=reduce_on_mxu)

    cp_kwargs = dict(dimension_semantics=("parallel", "arbitrary"))
    if vmem_limit_bytes is not None:
        cp_kwargs["vmem_limit_bytes"] = int(vmem_limit_bytes)

    outs = pl.pallas_call(
        kernel,
        out_shape=(acc_shape,) * 4,
        grid=(C, n_inner),
        in_specs=[
            pl.BlockSpec((B, 1, 1), lambda c, r: (0, 0, 0)),
            pl.BlockSpec((B, tR, _LANES), row_map),
            pl.BlockSpec((B, tR, _LANES), row_map),
        ],
        out_specs=(pl.BlockSpec((1, B, 1), lambda c, r: (c, 0, 0)),) * 4,
        compiler_params=pltpu.CompilerParams(**cp_kwargs),
    )(thr, rec3, tgt3)

    # All divides hoisted out of the kernel (done once, here).
    lens_f = lengths.astype(jnp.float32)
    denom_m = lens_f * jnp.float32(D)
    l1m_b = jnp.sum(outs[0], axis=(0, 2))               # (B,) raw masked sums
    l2m_b = jnp.sum(outs[1], axis=(0, 2))
    l1_masked = jnp.mean(l1m_b / denom_m)
    l2_masked = jnp.mean(l2m_b / denom_m)
    n_total = jnp.float32(B * T * D)
    l1_unmasked = jnp.sum(outs[2]) / n_total
    l2_unmasked = jnp.sum(outs[3]) / n_total
    return l1_masked, l2_masked, l1_unmasked, l2_unmasked


def _reference_losses(reconstructed, targets, lengths):
    diff = reconstructed.astype(jnp.float32) - targets.astype(jnp.float32)
    abs_d = jnp.abs(diff)
    sq_d = diff * diff
    T = reconstructed.shape[1]
    mask = (jnp.arange(T)[None, :] < lengths[:, None]).astype(jnp.float32)
    lens_f = lengths.astype(jnp.float32)
    l1m = jnp.mean(jnp.sum(jnp.mean(abs_d, axis=-1) * mask, axis=-1) / lens_f)
    l2m = jnp.mean(jnp.sum(jnp.mean(sq_d, axis=-1) * mask, axis=-1) / lens_f)
    return l1m, l2m, jnp.mean(abs_d), jnp.mean(sq_d)


if __name__ == "__main__":
    key = jax.random.PRNGKey(0)
    k1, k2, k3, k4, k5, k6 = jax.random.split(key, 6)

    # Case 1: module-consistent small shape (batch=2, max_audio_time=16, out_dim=32),
    # generation-aware default plan (single tile, no padding: 16*32 % 128 == 0).
    B, T, D = 2, 16, 32
    rec = jax.random.normal(k1, (B, T, D), dtype=jnp.float32)
    tgt = jax.random.normal(k2, (B, T, D), dtype=jnp.float32)
    lens = jnp.array([16, 10], dtype=jnp.int32)
    got = jax.block_until_ready(base_decoder_losses(rec, tgt, lens))
    want = _reference_losses(rec, tgt, lens)
    for g, w in zip(got, want):
        assert jnp.allclose(g, w, rtol=1e-5, atol=1e-5), (g, w)

    # Case 2: exercises the minimal 128-pad (T*D not a multiple of 128), the ragged
    # 2-way "parallel" split (clamped duplicate tile), the partial edge block, and
    # the multi-step "arbitrary" reduction axis.
    B, T, D = 2, 72, 40
    rec = jax.random.normal(k3, (B, T, D), dtype=jnp.float32)
    tgt = jax.random.normal(k4, (B, T, D), dtype=jnp.float32)
    lens = jnp.array([72, 50], dtype=jnp.int32)
    got = jax.block_until_ready(
        base_decoder_losses(rec, tgt, lens, tile_rows=8, num_splits=2))
    want = _reference_losses(rec, tgt, lens)
    for g, w in zip(got, want):
        assert jnp.allclose(g, w, rtol=1e-5, atol=1e-5), (g, w)

    # Case 3: odd batch / odd sizes, single edge-block tile with garbage tail rows
    # bounded purely in-kernel (no chunk padding).
    B, T, D = 3, 25, 24
    rec = jax.random.normal(k5, (B, T, D), dtype=jnp.float32)
    tgt = jax.random.normal(k6, (B, T, D), dtype=jnp.float32)
    lens = jnp.array([25, 13, 7], dtype=jnp.int32)
    got = jax.block_until_ready(base_decoder_losses(rec, tgt, lens))
    want = _reference_losses(rec, tgt, lens)
    for g, w in zip(got, want):
        assert jnp.allclose(g, w, rtol=1e-5, atol=1e-5), (g, w)

    print("KERNEL_OK")
</pallas_src>

<mosaic_0001>
module attributes {stable_mosaic.version = 11 : i64} {
  func.func @_decoder_loss_kernel(%arg0: i32, %arg1: i32, %arg2: memref<2x1x1xi32, #tpu.memory_space<vmem>>, %arg3: memref<2x8x128xf32, #tpu.memory_space<vmem>>, %arg4: memref<2x8x128xf32, #tpu.memory_space<vmem>>, %arg5: memref<1x2x1xf32, #tpu.memory_space<vmem>>, %arg6: memref<1x2x1xf32, #tpu.memory_space<vmem>>, %arg7: memref<1x2x1xf32, #tpu.memory_space<vmem>>, %arg8: memref<1x2x1xf32, #tpu.memory_space<vmem>>) attributes {dimension_semantics = [#tpu.dimension_semantics<parallel>, #tpu.dimension_semantics<arbitrary>], iteration_bounds = array<i64: 1, 1>, scalar_prefetch = 0 : i64, scratch_operands = 0 : i64, tpu.core_type = #tpu.core_type<tc>, window_params = [{pipeline_mode = #tpu.pipeline_mode<synchronous>, transform_indices = @transform_0, window_bounds = array<i64: 2, 1, 1>}, {transform_indices = @transform_1, window_bounds = array<i64: 2, 8, 128>}, {transform_indices = @transform_2, window_bounds = array<i64: 2, 8, 128>}, {transform_indices = @transform_3, window_bounds = array<i64: 1, 2, 1>}, {transform_indices = @transform_4, window_bounds = array<i64: 1, 2, 1>}, {transform_indices = @transform_5, window_bounds = array<i64: 1, 2, 1>}, {transform_indices = @transform_6, window_bounds = array<i64: 1, 2, 1>}]} {
    %c0_i32 = arith.constant 0 : i32
    %0 = arith.cmpi eq, %arg1, %c0_i32 : i32
    %1 = arith.extui %0 : i1 to i32
    %c0_i32_0 = arith.constant 0 : i32
    %2 = arith.cmpi ne, %1, %c0_i32_0 : i32
    scf.if %2 {
      %cst_43 = arith.constant 0.000000e+00 : f32
      %61 = vector.broadcast %cst_43 : f32 to vector<1x2x1xf32>
      %c0_44 = arith.constant 0 : index
      %c0_45 = arith.constant 0 : index
      %c0_46 = arith.constant 0 : index
      %62 = vector.load %arg5[%c0_44, %c0_45, %c0_46] : memref<1x2x1xf32, #tpu.memory_space<vmem>>, vector<1x2x1xf32>
      tpu.vector_store %arg5[%c0_44, %c0_45, %c0_46], %61 {strides = array<i32>} : memref<1x2x1xf32, #tpu.memory_space<vmem>>, vector<1x2x1xf32>,
      %cst_47 = arith.constant 0.000000e+00 : f32
      %63 = vector.broadcast %cst_47 : f32 to vector<1x2x1xf32>
      %c0_48 = arith.constant 0 : index
      %c0_49 = arith.constant 0 : index
      %c0_50 = arith.constant 0 : index
      %64 = vector.load %arg6[%c0_48, %c0_49, %c0_50] : memref<1x2x1xf32, #tpu.memory_space<vmem>>, vector<1x2x1xf32>
      tpu.vector_store %arg6[%c0_48, %c0_49, %c0_50], %63 {strides = array<i32>} : memref<1x2x1xf32, #tpu.memory_space<vmem>>, vector<1x2x1xf32>,
      %cst_51 = arith.constant 0.000000e+00 : f32
      %65 = vector.broadcast %cst_51 : f32 to vector<1x2x1xf32>
      %c0_52 = arith.constant 0 : index
      %c0_53 = arith.constant 0 : index
      %c0_54 = arith.constant 0 : index
      %66 = vector.load %arg7[%c0_52, %c0_53, %c0_54] : memref<1x2x1xf32, #tpu.memory_space<vmem>>, vector<1x2x1xf32>
      tpu.vector_store %arg7[%c0_52, %c0_53, %c0_54], %65 {strides = array<i32>} : memref<1x2x1xf32, #tpu.memory_space<vmem>>, vector<1x2x1xf32>,
      %cst_55 = arith.constant 0.000000e+00 : f32
      %67 = vector.broadcast %cst_55 : f32 to vector<1x2x1xf32>
      %c0_56 = arith.constant 0 : index
      %c0_57 = arith.constant 0 : index
      %c0_58 = arith.constant 0 : index
      %68 = vector.load %arg8[%c0_56, %c0_57, %c0_58] : memref<1x2x1xf32, #tpu.memory_space<vmem>>, vector<1x2x1xf32>
      tpu.vector_store %arg8[%c0_56, %c0_57, %c0_58], %67 {strides = array<i32>} : memref<1x2x1xf32, #tpu.memory_space<vmem>>, vector<1x2x1xf32>,
    } else {
    }
    %3 = tpu.iota {dimensions = array<i32: 1>} : vector<1x8x128xi32>
    %4 = tpu.iota {dimensions = array<i32: 2>} : vector<1x8x128xi32>
    %c128_i32 = arith.constant 128 : i32
    %5 = vector.broadcast %c128_i32 : i32 to vector<1x8x128xi32>
    %6 = arith.muli %3, %5 : vector<1x8x128xi32>
    %7 = arith.addi %6, %4 : vector<1x8x128xi32>
    %c1_i32 = arith.constant 1 : i32
    %8 = arith.muli %arg0, %c1_i32 : i32
    %9 = arith.addi %8, %arg1 : i32
    %c1024_i32 = arith.constant 1024 : i32
    %10 = arith.muli %9, %c1024_i32 : i32
    %c0 = arith.constant 0 : index
    %c0_1 = arith.constant 0 : index
    %c0_2 = arith.constant 0 : index
    %11 = vector.load %arg2[%c0, %c0_1, %c0_2] : memref<2x1x1xi32, #tpu.memory_space<vmem>>, vector<2x1x1xi32>
    %12 = vector.broadcast %10 : i32 to vector<2x1x1xi32>
    %13 = arith.subi %11, %12 : vector<2x1x1xi32>
    %c512_i32 = arith.constant 512 : i32
    %14 = arith.subi %c512_i32, %10 : i32
    %c0_3 = arith.constant 0 : index
    %c0_4 = arith.constant 0 : index
    %c0_5 = arith.constant 0 : index
    %15 = vector.load %arg3[%c0_3, %c0_4, %c0_5] : memref<2x8x128xf32, #tpu.memory_space<vmem>>, vector<2x8x128xf32>
    %c0_6 = arith.constant 0 : index
    %c0_7 = arith.constant 0 : index
    %c0_8 = arith.constant 0 : index
    %16 = vector.load %arg4[%c0_6, %c0_7, %c0_8] : memref<2x8x128xf32, #tpu.memory_space<vmem>>, vector<2x8x128xf32>
    %17 = arith.subf %15, %16 : vector<2x8x128xf32>
    %18 = vector.broadcast %14 : i32 to vector<1x8x128xi32>
    %19 = arith.cmpi slt, %7, %18 : vector<1x8x128xi32>
    %cst = arith.constant 0.000000e+00 : f32
    %20 = vector.shape_cast %19 : vector<1x8x128xi1> to vector<1x8x128xi1>
    %21 = vector.broadcast %20 : vector<1x8x128xi1> to vector<2x8x128xi1>
    %22 = vector.broadcast %cst : f32 to vector<2x8x128xf32>
    %23 = arith.select %21, %17, %22 : vector<2x8x128xi1>, vector<2x8x128xf32>
    %24 = math.absf %23 : vector<2x8x128xf32>
    %25 = arith.mulf %23, %23 : vector<2x8x128xf32>
    %26 = vector.broadcast %7 : vector<1x8x128xi32> to vector<2x8x128xi32>
    %27 = vector.broadcast %13 : vector<2x1x1xi32> to vector<2x8x128xi32>
    %28 = arith.cmpi slt, %26, %27 : vector<2x8x128xi32>
    %cst_9 = arith.constant 0.000000e+00 : f32
    %29 = vector.broadcast %cst_9 : f32 to vector<2x8x128xf32>
    %30 = arith.select %28, %24, %29 : vector<2x8x128xi1>, vector<2x8x128xf32>
    %cst_10 = arith.constant 0.000000e+00 : f32
    %31 = vector.broadcast %cst_10 : f32 to vector<2x8x128xf32>
    %32 = arith.select %28, %25, %31 : vector<2x8x128xi1>, vector<2x8x128xf32>
    %c0_11 = arith.constant 0 : index
    %c0_12 = arith.constant 0 : index
    %c0_13 = arith.constant 0 : index
    %33 = vector.load %arg5[%c0_11, %c0_12, %c0_13] : memref<1x2x1xf32, #tpu.memory_space<vmem>>, vector<1x2x1xf32>
    %cst_14 = arith.constant dense<0.000000e+00> : vector<2x8xf32>
    %34 = vector.multi_reduction <add>, %30, %cst_14 [2] : vector<2x8x128xf32> to vector<2x8xf32>
    %cst_15 = arith.constant dense<0.000000e+00> : vector<2xf32>
    %35 = vector.multi_reduction <add>, %34, %cst_15 [1] : vector<2x8xf32> to vector<2xf32>
    %36 = vector.shape_cast %35 : vector<2xf32> to vector<2x1xf32>
    %37 = vector.shape_cast %36 : vector<2x1xf32> to vector<1x2x1xf32>
    %38 = arith.addf %33, %37 : vector<1x2x1xf32>
    %c0_16 = arith.constant 0 : index
    %c0_17 = arith.constant 0 : index
    %c0_18 = arith.constant 0 : index
    %39 = vector.load %arg5[%c0_16, %c0_17, %c0_18] : memref<1x2x1xf32, #tpu.memory_space<vmem>>, vector<1x2x1xf32>
    tpu.vector_store %arg5[%c0_16, %c0_17, %c0_18], %38 {strides = array<i32>} : memref<1x2x1xf32, #tpu.memory_space<vmem>>, vector<1x2x1xf32>,
    %c0_19 = arith.constant 0 : index
    %c0_20 = arith.constant 0 : index
    %c0_21 = arith.constant 0 : index
    %40 = vector.load %arg6[%c0_19, %c0_20, %c0_21] : memref<1x2x1xf32, #tpu.memory_space<vmem>>, vector<1x2x1xf32>
    %cst_22 = arith.constant dense<0.000000e+00> : vector<2x8xf32>
    %41 = vector.multi_reduction <add>, %32, %cst_22 [2] : vector<2x8x128xf32> to vector<2x8xf32>
    %cst_23 = arith.constant dense<0.000000e+00> : vector<2xf32>
    %42 = vector.multi_reduction <add>, %41, %cst_23 [1] : vector<2x8xf32> to vector<2xf32>
    %43 = vector.shape_cast %42 : vector<2xf32> to vector<2x1xf32>
    %44 = vector.shape_cast %43 : vector<2x1xf32> to vector<1x2x1xf32>
    %45 = arith.addf %40, %44 : vector<1x2x1xf32>
    %c0_24 = arith.constant 0 : index
    %c0_25 = arith.constant 0 : index
    %c0_26 = arith.constant 0 : index
    %46 = vector.load %arg6[%c0_24, %c0_25, %c0_26] : memref<1x2x1xf32, #tpu.memory_space<vmem>>, vector<1x2x1xf32>
    tpu.vector_store %arg6[%c0_24, %c0_25, %c0_26], %45 {strides = array<i32>} : memref<1x2x1xf32, #tpu.memory_space<vmem>>, vector<1x2x1xf32>,
    %c0_27 = arith.constant 0 : index
    %c0_28 = arith.constant 0 : index
    %c0_29 = arith.constant 0 : index
    %47 = vector.load %arg7[%c0_27, %c0_28, %c0_29] : memref<1x2x1xf32, #tpu.memory_space<vmem>>, vector<1x2x1xf32>
    %cst_30 = arith.constant dense<0.000000e+00> : vector<2x8xf32>
    %48 = vector.multi_reduction <add>, %24, %cst_30 [2] : vector<2x8x128xf32> to vector<2x8xf32>
    %cst_31 = arith.constant dense<0.000000e+00> : vector<2xf32>
    %49 = vector.multi_reduction <add>, %48, %cst_31 [1] : vector<2x8xf32> to vector<2xf32>
    %50 = vector.shape_cast %49 : vector<2xf32> to vector<2x1xf32>
    %51 = vector.shape_cast %50 : vector<2x1xf32> to vector<1x2x1xf32>
    %52 = arith.addf %47, %51 : vector<1x2x1xf32>
    %c0_32 = arith.constant 0 : index
    %c0_33 = arith.constant 0 : index
    %c0_34 = arith.constant 0 : index
    %53 = vector.load %arg7[%c0_32, %c0_33, %c0_34] : memref<1x2x1xf32, #tpu.memory_space<vmem>>, vector<1x2x1xf32>
    tpu.vector_store %arg7[%c0_32, %c0_33, %c0_34], %52 {strides = array<i32>} : memref<1x2x1xf32, #tpu.memory_space<vmem>>, vector<1x2x1xf32>,
    %c0_35 = arith.constant 0 : index
    %c0_36 = arith.constant 0 : index
    %c0_37 = arith.constant 0 : index
    %54 = vector.load %arg8[%c0_35, %c0_36, %c0_37] : memref<1x2x1xf32, #tpu.memory_space<vmem>>, vector<1x2x1xf32>
    %cst_38 = arith.constant dense<0.000000e+00> : vector<2x8xf32>
    %55 = vector.multi_reduction <add>, %25, %cst_38 [2] : vector<2x8x128xf32> to vector<2x8xf32>
    %cst_39 = arith.constant dense<0.000000e+00> : vector<2xf32>
    %56 = vector.multi_reduction <add>, %55, %cst_39 [1] : vector<2x8xf32> to vector<2xf32>
    %57 = vector.shape_cast %56 : vector<2xf32> to vector<2x1xf32>
    %58 = vector.shape_cast %57 : vector<2x1xf32> to vector<1x2x1xf32>
    %59 = arith.addf %54, %58 : vector<1x2x1xf32>
    %c0_40 = arith.constant 0 : index
    %c0_41 = arith.constant 0 : index
    %c0_42 = arith.constant 0 : index
    %60 = vector.load %arg8[%c0_40, %c0_41, %c0_42] : memref<1x2x1xf32, #tpu.memory_space<vmem>>, vector<1x2x1xf32>
    tpu.vector_store %arg8[%c0_40, %c0_41, %c0_42], %59 {strides = array<i32>} : memref<1x2x1xf32, #tpu.memory_space<vmem>>, vector<1x2x1xf32>,
    return
  }
  func.func @transform_0(%arg0: i32, %arg1: i32) -> (i32, i32, i32) {
    %c0_i32 = arith.constant 0 : i32
    %c0_i32_0 = arith.constant 0 : i32
    %c0_i32_1 = arith.constant 0 : i32
    %c0_i32_2 = arith.constant 0 : i32
    return %c0_i32, %c0_i32_0, %c0_i32_1 : i32, i32, i32
  }
  func.func @transform_1(%arg0: i32, %arg1: i32) -> (i32, i32, i32) {
    %c1_i32 = arith.constant 1 : i32
    %0 = arith.muli %arg0, %c1_i32 : i32
    %1 = arith.addi %0, %arg1 : i32
    %c0_i32 = arith.constant 0 : i32
    %c0_i32_0 = arith.constant 0 : i32
    %c0_i32_1 = arith.constant 0 : i32
    return %c0_i32, %1, %c0_i32_0 : i32, i32, i32
  }
  func.func @transform_2(%arg0: i32, %arg1: i32) -> (i32, i32, i32) {
    %c1_i32 = arith.constant 1 : i32
    %0 = arith.muli %arg0, %c1_i32 : i32
    %1 = arith.addi %0, %arg1 : i32
    %c0_i32 = arith.constant 0 : i32
    %c0_i32_0 = arith.constant 0 : i32
    %c0_i32_1 = arith.constant 0 : i32
    return %c0_i32, %1, %c0_i32_0 : i32, i32, i32
  }
  func.func @transform_3(%arg0: i32, %arg1: i32) -> (i32, i32, i32) {
    %c0_i32 = arith.constant 0 : i32
    %c0_i32_0 = arith.constant 0 : i32
    %c0_i32_1 = arith.constant 0 : i32
    return %arg0, %c0_i32, %c0_i32_0 : i32, i32, i32
  }
  func.func @transform_4(%arg0: i32, %arg1: i32) -> (i32, i32, i32) {
    %c0_i32 = arith.constant 0 : i32
    %c0_i32_0 = arith.constant 0 : i32
    %c0_i32_1 = arith.constant 0 : i32
    return %arg0, %c0_i32, %c0_i32_0 : i32, i32, i32
  }
  func.func @transform_5(%arg0: i32, %arg1: i32) -> (i32, i32, i32) {
    %c0_i32 = arith.constant 0 : i32
    %c0_i32_0 = arith.constant 0 : i32
    %c0_i32_1 = arith.constant 0 : i32
    return %arg0, %c0_i32, %c0_i32_0 : i32, i32, i32
  }
  func.func @transform_6(%arg0: i32, %arg1: i32) -> (i32, i32, i32) {
    %c0_i32 = arith.constant 0 : i32
    %c0_i32_0 = arith.constant 0 : i32
    %c0_i32_1 = arith.constant 0 : i32
    return %arg0, %c0_i32, %c0_i32_0 : i32, i32, i32
  }
}

</mosaic_0001>

<bundles_post_ra>
// kernel: tpu_custom_call.1
= control target key start
LH: loop header
LB: loop body
LE: loop exit
PB: predicated region body
PF: predicated region fallthrough
CT: control target
= control target key end

     0   :  { %12 = vsyncpa [#allocation3], 0  ;;  %s535_s0 = inlined_call_operand.vmem [shape: s32[2,1,1], index: 0, kind: input, shape index: {}]   ;;  %s536_s1 = inlined_call_operand.hbm [shape: f32[2,4,128], index: 1, kind: input, shape index: {}]   ;;  %s537_s2 = inlined_call_operand.vmem [shape: f32[2,4,128], index: 2, kind: input, shape index: {}]   ;;  %s538_s3 = inlined_call_operand.vmem [shape: f32[1,2,1], index: 3, kind: output, shape index: {0}]   ;;  %s539_s4 = inlined_call_operand.vmem [shape: f32[1,2,1], index: 4, kind: output, shape index: {1}]   ;;  %s540_s5 = inlined_call_operand.vmem [shape: f32[1,2,1], index: 5, kind: output, shape index: {2}]   ;;  %s541_s6 = inlined_call_operand.vmem [shape: f32[1,2,1], index: 6, kind: output, shape index: {3}]  }
   0x1   :  { %23 = vsyncadd [#allocation3], 128  ;;  %s33_s21 = sld [smem:[#allocation0]]   ;;  %s414_s22 = smov [#allocation2]  }
   0x2   :  { %s41_s23 = sshll.u32 %s414_s22, 4  ;;  %s415_s24 = smov 64   ;;  %s42_s23 = int_to_ptr.vmem [resolvable:$true] %s41_s23 }
   0x3   :  { %48 = sst [smem:[#allocation6]] %s415_s24  ;;  %s416_s25 = smov 128  }
   0x4   :  { %50 = sst [smem:[#allocation6 + $0x1]] %s416_s25  ;;  %s417_s26 = smov 1  }
   0x5   :  { %52 = sst [smem:[#allocation6 + $0x2]] %s417_s26  ;;  %s418_s29 = smov 4  }
   0x6   :  { %54 = sst [smem:[#allocation6 + $0x3]] %s415_s24  ;;  %s419_s30 = smov [#allocation3]  }
   0x7   :  { %s344_s27 = sshll.u32 %s33_s21, 26  ;;  %56 = sst [smem:[#allocation6 + $0x4]] %s415_s24 }
   0x8   :  { %s345_s28 = sadd.s32 134217728, %s344_s27  ;;  %58 = sst [smem:[#allocation6 + $0x5]] %s418_s29 }
   0x9   :  { %s420_s7 = smov [#allocation5]   ;;  %s410_s10 = smov 0  }
   0xa   :  { %60 = dma.general %s536_s1, 128, %s42_s23, %s419_s30, %s420_s7, [#allocation6], %s345_s28, 0  }
   0xb LB: > { %v87_v0 = vld [vmem:[%s537_s2] sm:$0xf]  ;;  %v89_v1 = vld [vmem:[%s537_s2 + $0x4] sm:$0xf]  ;;  %s81_s10 = sadd.s32 1, %s412_s10   ;;  %s412_s10 = sphi %s410_s10, %s81_s10  }
   0xc   : > { %88 = vst [vmem:[#allocation4] sm:$0xf] %v87_v0  ;;  %90 = vst [vmem:[#allocation4 + $0x8] sm:$0xf] %v89_v1  ;;  %p80_p0 = scmp.ge.s32.totalorder %s81_s10, 1 }
   0xe   :  { %83 = sbr.rel (!%p80_p0) target bundleno = 11 (0xb), region = 118 }
  0x15   :  { %408 = dma.done.wait [#allocation3], 256  }
  0x16   :  { %409 = vsyncadd [#allocation3], 4294967040  ;;  %v160_v2 = vlaneseq  ;;  %v421_v3 = vmov 0   ;;  %v348_v7 = vld [vmem:[%s535_s0] ss:$0 sm:$0xff]  ;;  %v176_v12 = vld [vmem:[#allocation4] sm:$0xff] }
  0x17   :  { %391 = vset.pattern.permute.xlu0 %v421_v3  ;;  %v349_v8 = vld [vmem:[%s535_s0 + $0x1] ss:$0 sm:$0xff]  ;;  %v175_v14 = vld [vmem:[#allocation2 + $0x8] sm:$0xff]  ;;  %v177_v15 = vld [vmem:[#allocation4 + $0x8] sm:$0xff]  ;;  %vm155_vm3 = vcmask 1024   ;;  %v422_v29 = vmov 0.0  }
  0x18   :  { %v161_v4 = vshrl.u32 %v160_v2, 7  ;;  %v163_v5 = vand.u32 127, %v160_v2  ;;  %199 = vperm.xlu0 %391, %v348_v7   ;;  %v174_v11 = vld [vmem:[#allocation2] sm:$0xff]  ;;  %v179_v17 = vsub.f32 %v175_v14, %v177_v15  ;;  %156 = vst.msk [vmem:[%s538_s3] sm:$0x3] %vm155_vm3, %v422_v29  ;;  %vm225_vm4 = vcmask 1041409  }
  0x19   :  { %v178_v13 = vsub.f32 %v174_v11, %v176_v12  ;;  %157 = vst.msk [vmem:[%s539_s4] sm:$0x3] %vm155_vm3, %v422_v29  ;;  %158 = vst.msk [vmem:[%s540_s5] sm:$0x3] %vm155_vm3, %v422_v29  ;;  %vm228_vm5 = vcmask 58368  }
  0x1a   :  { %v467_v6 = vsub.s32 %v163_v5, %v161_v4  ;;  %v164_v9 = vmul.u32 128, %v161_v4  ;;  %159 = vst.msk [vmem:[%s541_s6] sm:$0x3] %vm155_vm3, %v422_v29 }
  0x1c   :  { %202 = vperm.xlu0 %391, %v349_v8   ;;  %v165_v10 = vadd.s32 %v164_v9, %v163_v5 }
  0x1e   :  { %vm181_vm0 = vcmp.lt.s32.totalorder %v165_v10, 512 }
  0x1f   :  { %v184_v16 = vsel %vm181_vm0, %v178_v13, 0.0  ;;  %v185_v20 = vsel %vm181_vm0, %v179_v17, 0.0  ;;  %v210_v54 = vld [vmem:[%s538_s3] sm:$0x3] }
  0x20   :  { %v188_v18 = vmul.f32 %v184_v16, %v184_v16  ;;  %v186_v19 = vand.u32 2147483647, %v184_v16  ;;  %v187_v24 = vand.u32 2147483647, %v185_v20  ;;  %v189_v27 = vmul.f32 %v185_v20, %v185_v20  ;;  %v235_v57 = vld [vmem:[%s539_s4] sm:$0x3] }
  0x21   :  { %v257_v60 = vld [vmem:[%s540_s5] sm:$0x3] }
  0x22   :  { %v279_v61 = vld [vmem:[%s541_s6] sm:$0x3] }
  0x97   :  { %v200_v21 = vpop.permute.xlu0 %199 }
  0x98   :  { %vm204_vm1 = vcmp.lt.s32.totalorder %v165_v10, %v200_v21 }
  0x99   :  { %v208_v22 = vsel %vm204_vm1, %v188_v18, 0.0  ;;  %v206_v23 = vsel %vm204_vm1, %v186_v19, 0.0 }
  0x9a   :  { %236 = vadd.xlane.f32.xlu0 %v208_v22  ;;  %211 = vadd.xlane.f32.xlu1 %v206_v23 }
  0x9b   :  { %v203_v25 = vpop.permute.xlu0 %202 }
  0x9c   :  { %vm205_vm2 = vcmp.lt.s32.totalorder %v165_v10, %v203_v25 }
  0x9d   :  { %v207_v26 = vsel %vm205_vm2, %v187_v24, 0.0  ;;  %v209_v28 = vsel %vm205_vm2, %v189_v27, 0.0 }
  0x9e   :  { %213 = vadd.xlane.f32.xlu1 %v207_v26 }
  0xa2   :  { %258 = vadd.xlane.f32.xlu1 %v186_v19 }
  0xa6   :  { %260 = vadd.xlane.f32.xlu1 %v187_v24 }
  0xaa   :  { %280 = vadd.xlane.f32.xlu1 %v188_v18 }
  0xae   :  { %238 = vadd.xlane.f32.xlu1 %v209_v28 }
  0xb2   :  { %282 = vadd.xlane.f32.xlu1 %v189_v27 }
 0x127   :  { %v212_v30 = vpop.xlane.xlu1 %211  ;;  %v237_v39 = vpop.xlane.xlu0 %236 }
 0x128   :  { %v220_v32 = vrot.slane %v212_v30, %v467_v6  ;;  %v245_v41 = vrot.slane %v237_v39, %v467_v6 }
 0x12b   :  { %v214_v31 = vpop.xlane.xlu1 %213 }
 0x12c   :  { %v224_v33 = vrot.slane %v214_v31, %v467_v6 }
 0x12e   :  { %v226_v34 = vsel %vm225_vm4, %v224_v33, %v220_v32 }
 0x12f   :  { %v259_v35 = vpop.xlane.xlu1 %258  ;;  %v229_v36 = vsel %vm228_vm5, %v226_v34, 0.0 }
 0x130   :  { %230 = vadd.xlane.f32.xlu1 %v229_v36  ;;  %v267_v44 = vrot.slane %v259_v35, %v467_v6 }
 0x133   :  { %v261_v37 = vpop.xlane.xlu1 %260 }
 0x134   :  { %v271_v42 = vrot.slane %v261_v37, %v467_v6 }
 0x136   :  { %v272_v50 = vsel %vm225_vm4, %v271_v42, %v267_v44 }
 0x137   :  { %v281_v38 = vpop.xlane.xlu1 %280  ;;  %v274_v53 = vsel %vm228_vm5, %v272_v50, 0.0 }
 0x138   :  { %v289_v48 = vrot.slane %v281_v38, %v467_v6 }
 0x13b   :  { %v239_v40 = vpop.xlane.xlu1 %238 }
 0x13c   :  { %v249_v43 = vrot.slane %v239_v40, %v467_v6 }
 0x13e   :  { %v250_v45 = vsel %vm225_vm4, %v249_v43, %v245_v41 }
 0x13f   :  { %v283_v46 = vpop.xlane.xlu1 %282  ;;  %v252_v47 = vsel %vm228_vm5, %v250_v45, 0.0 }
 0x140   :  { %v293_v49 = vrot.slane %v283_v46, %v467_v6  ;;  %253 = vadd.xlane.f32.xlu1 %v252_v47 }
 0x142   :  { %v294_v51 = vsel %vm225_vm4, %v293_v49, %v289_v48 }
 0x143   :  { %v296_v52 = vsel %vm228_vm5, %v294_v51, 0.0 }
 0x144   :  { %297 = vadd.xlane.f32.xlu0 %v296_v52  ;;  %275 = vadd.xlane.f32.xlu1 %v274_v53 }
 0x1bd   :  { %v231_v55 = vpop.xlane.xlu1 %230 }
 0x1be   :  { %v232_v56 = vadd.f32 %v231_v55, %v210_v54 }
 0x1c0   :  { %234 = vst.msk [vmem:[%s538_s3] sm:$0x3] %vm155_vm3, %v232_v56 }
 0x1cd   :  { %v254_v58 = vpop.xlane.xlu1 %253 }
 0x1ce   :  { %v255_v59 = vadd.f32 %v254_v58, %v235_v57 }
 0x1d0   :  { %256 = vst.msk [vmem:[%s539_s4] sm:$0x3] %vm155_vm3, %v255_v59 }
 0x1d1   :  { %v276_v62 = vpop.xlane.xlu1 %275  ;;  %v298_v63 = vpop.xlane.xlu0 %297 }
 0x1d2   :  { %v277_v0 = vadd.f32 %v276_v62, %v257_v60  ;;  %v299_v1 = vadd.f32 %v298_v63, %v279_v61 }
 0x1d4   :  { %278 = vst.msk [vmem:[%s540_s5] sm:$0x3] %vm155_vm3, %v277_v0  ;;  %300 = vst.msk [vmem:[%s541_s6] sm:$0x3] %vm155_vm3, %v299_v1 }
 0x1d5   :  { %317 = vsyncpa [#allocation3], 1 }

</bundles_post_ra>
